<compile_context>
chip_gen: v6e
topology: v6e:2x2x1
jax: 0.10.0
libtpu: 0.0.40
codegen_flags: <defaults>
</compile_context>

<pallas_src>
import functools
import math

import jax
import jax.numpy as jnp
from jax.experimental import pallas as pl
from jax.experimental.pallas import tpu as pltpu


def _round_up(x: int, m: int) -> int:
    return ((x + m - 1) // m) * m


def _convnext_block_kernel(
    xmain_ref,   # (TILE_T, C)  rows [t*TILE_T, (t+1)*TILE_T) of the padded input
    xhalo_ref,   # (HB, C)      rows [(t+1)*TILE_T, (t+1)*TILE_T + HB)
    wdw_ref,     # (K, C)       depthwise conv weights (tap-major), f32
    bdw_ref,     # (1, C)       depthwise conv bias, f32
    w1_ref,      # (C, I)       pwconv1 weight, LN scale folded in (bf16)
    b1_ref,      # (1, I)       pwconv1 bias, LN bias folded in (f32)
    w2_ref,      # (I, C)       pwconv2 weight, layer-scale gamma folded (bf16)
    b2_ref,      # (1, C)       pwconv2 bias, gamma folded (f32)
    out_ref,     # (TILE_T, C)  output tile
    win_ref,     # (TILE_T+HB, C) f32 VMEM scratch: assembled conv window
    *,
    tile_t: int,
    K: int,
    dilation: int,
    off0: int,      # start of tap 0 inside the window (= pad_a - pad)
    res_off: int,   # start of the residual rows inside the window (= pad_a)
    inv_c: float,   # 1 / C (true channel count)
    eps: float,
):
    tt = tile_t
    hb = win_ref.shape[0] - tt

    # Assemble the window once in VMEM (f32); taps & residual are ref slices.
    win_ref[0:tt, :] = xmain_ref[...].astype(jnp.float32)
    win_ref[tt:tt + hb, :] = xhalo_ref[...].astype(jnp.float32)

    # ---- depthwise conv1d (groups=dim); zero padding already in the window.
    wdw = wdw_ref[...].astype(jnp.float32)
    acc = win_ref[pl.ds(off0, tt), :] * wdw[0:1, :]
    for i in range(1, K):                       # small static K -> unrolled FMAs
        s = off0 + i * dilation
        acc = acc + win_ref[pl.ds(s, tt), :] * wdw[i:i + 1, :]
    acc = acc + bdw_ref[...]

    # ---- LayerNorm statistics (affine folded into w1/b1 on the host).
    mean = jnp.sum(acc, axis=-1, keepdims=True) * inv_c
    msq = jnp.sum(acc * acc, axis=-1, keepdims=True) * inv_c
    var = jnp.maximum(msq - mean * mean, 0.0)   # clamp cancellation negatives
    xn = (acc - mean) * jax.lax.rsqrt(var + eps)

    # ---- pwconv1 (Linear C -> I), bf16 MXU operands, f32 accumulation.
    h = jnp.dot(xn.astype(w1_ref.dtype), w1_ref[...],
                preferred_element_type=jnp.float32)
    h = h + b1_ref[...]
    # tanh-approximate GELU (EUP) instead of exact erf (VALU polynomial).
    c0 = math.sqrt(2.0 / math.pi)
    h = 0.5 * h * (1.0 + jnp.tanh(c0 * (h + 0.044715 * (h * h * h))))

    # ---- pwconv2 (Linear I -> C); layer-scale gamma already folded in.
    o = jnp.dot(h.astype(w2_ref.dtype), w2_ref[...],
                preferred_element_type=jnp.float32)
    o = o + b2_ref[...]

    # ---- residual (rows res_off .. res_off+tt of the window).
    out_ref[...] = (o + win_ref[pl.ds(res_off, tt), :]).astype(out_ref.dtype)


def convnext_block(x_ncw, params, *, kernel: int, dilation: int, eps: float = 1e-6,
                   tile_t: int | None = None, mxu_dtype=jnp.bfloat16):
    """x_ncw: (B, C, T) float32 (PyTorch NCW layout).  Returns (B, C, T)."""
    B, C, T = x_ncw.shape
    K = kernel
    I = params["w1"].shape[1]
    pad = dilation * (K // 2)

    # halo sizing: pad_a = power of two >= max(8, pad) so the (2*pad_a)-row halo
    # block divides the time tile and stays sublane-aligned.
    pad_a = 8
    while pad_a < pad:
        pad_a *= 2
    HB = 2 * pad_a

    # Per-generation defaults: v7x has 64 MiB VMEM / TensorCore, v5e/v6e 128 MiB.
    try:
        vmem_cap = int(pltpu.get_tpu_info().vmem_capacity_bytes)
    except Exception:
        vmem_cap = 0
    if vmem_cap >= 96 * 1024 * 1024:
        vmem_limit = 100 * 1024 * 1024
        default_tt = 512
    elif vmem_cap > 0:
        vmem_limit = max(32 * 1024 * 1024,
                         min(56 * 1024 * 1024, int(0.8 * vmem_cap)))
        default_tt = 256
    else:
        vmem_limit = 48 * 1024 * 1024
        default_tt = 256
    if tile_t is None:
        tile_t = default_tt

    # time tile: multiple of HB (so halo block indices line up), clamped for
    # short sequences; T rounded up to a whole number of tiles.
    tt = min(tile_t, _round_up(T, 8))
    tt = _round_up(tt, HB)
    T_round = _round_up(T, tt)
    NT = T_round // tt
    Tg = T_round + HB          # only the last tile's halo needs extra rows

    # host glue: NCW -> NTC, place the signal at time offset pad_a, pad the
    # tail with HB zero rows.  No channel padding in HBM (true C everywhere).
    x_ntc = jnp.transpose(x_ncw, (0, 2, 1))                        # (B, T, C)
    x_big = jnp.pad(x_ntc, ((0, 0), (pad_a, Tg - T - pad_a), (0, 0)))

    # Fold LayerNorm affine into pwconv1 and layer-scale gamma into pwconv2.
    # Folds are done in f32; only the MXU weights are cast to bf16 afterwards.
    ln_w = params["ln_w"].reshape(-1).astype(jnp.float32)
    ln_b = params["ln_b"].reshape(-1).astype(jnp.float32)
    gamma = params["gamma"].reshape(-1).astype(jnp.float32)
    w1 = params["w1"].astype(jnp.float32)
    w2 = params["w2"].astype(jnp.float32)
    w1f = (w1 * ln_w[:, None]).astype(mxu_dtype)                            # (C, I)
    b1f = (ln_b @ w1 + params["b1"].reshape(-1))[None, :].astype(jnp.float32)  # (1, I)
    w2f = (w2 * gamma[None, :]).astype(mxu_dtype)                           # (I, C)
    b2f = (params["b2"].reshape(-1) * gamma)[None, :].astype(jnp.float32)   # (1, C)
    wdw = params["w_dw"].astype(jnp.float32)                                # (K, C)
    bdw = params["b_dw"].reshape(1, -1).astype(jnp.float32)                 # (1, C)

    kern = functools.partial(
        _convnext_block_kernel, tile_t=tt, K=K, dilation=dilation,
        off0=pad_a - pad, res_off=pad_a, inv_c=1.0 / C, eps=eps,
    )

    ratio = tt // HB
    full = lambda shape: pl.BlockSpec(shape, lambda b, t: (0,) * len(shape))

    out_big = pl.pallas_call(
        kern,
        out_shape=jax.ShapeDtypeStruct((B, T_round, C), x_ncw.dtype),
        grid_spec=pltpu.PrefetchScalarGridSpec(
            num_scalar_prefetch=0,
            grid=(B, NT),
            in_specs=[
                # main time tile of this grid step
                pl.BlockSpec((None, tt, C), lambda b, t: (b, t, 0)),
                # halo: first HB rows of the next tile (same array, second spec)
                pl.BlockSpec((None, HB, C), lambda b, t: (b, (t + 1) * ratio, 0)),
                full((K, C)),    # dw weight
                full((1, C)),    # dw bias
                full((C, I)),    # pwconv1 weight (bf16, LN scale folded)
                full((1, I)),    # pwconv1 bias  (LN bias folded)
                full((I, C)),    # pwconv2 weight (bf16, gamma folded)
                full((1, C)),    # pwconv2 bias  (gamma folded)
            ],
            out_specs=pl.BlockSpec((None, tt, C), lambda b, t: (b, t, 0)),
            scratch_shapes=[pltpu.VMEM((tt + HB, C), jnp.float32)],
        ),
        compiler_params=pltpu.CompilerParams(
            dimension_semantics=("parallel", "parallel"),
            vmem_limit_bytes=vmem_limit,
        ),
    )(x_big, x_big, wdw, bdw, w1f, b1f, w2f, b2f)

    return jnp.transpose(out_big[:, :T, :], (0, 2, 1))             # (B, C, T)


def _reference(x_ncw, params, *, kernel: int, dilation: int, eps: float = 1e-6):
    """Pure-JAX reference mirroring the PyTorch forward (exact-erf GELU)."""
    B, C, T = x_ncw.shape
    pad = dilation * (kernel // 2)
    w = jnp.transpose(params["w_dw"], (1, 0))[:, None, :]          # (C, 1, K)
    y = jax.lax.conv_general_dilated(
        x_ncw, w, window_strides=(1,), padding=[(pad, pad)],
        rhs_dilation=(dilation,), feature_group_count=C,
        dimension_numbers=("NCH", "OIH", "NCH"),
    ) + params["b_dw"][0][None, :, None]
    y = jnp.transpose(y, (0, 2, 1))                                # (B, T, C)
    mean = jnp.mean(y, -1, keepdims=True)
    var = jnp.mean((y - mean) ** 2, -1, keepdims=True)
    y = (y - mean) * jax.lax.rsqrt(var + eps) * params["ln_w"][0] + params["ln_b"][0]
    h = y @ params["w1"] + params["b1"][0]
    h = 0.5 * h * (1.0 + jax.lax.erf(h / math.sqrt(2.0)))
    o = h @ params["w2"] + params["b2"][0]
    o = o * params["gamma"][0]
    return jnp.transpose(o, (0, 2, 1)) + x_ncw


if __name__ == "__main__":
    # Small shapes consistent with the module: (B, dim, T)
    B, DIM, T = 2, 8, 16
    INTER = 32
    KERNEL = 3
    DILATION = 2

    key = jax.random.PRNGKey(0)
    keys = jax.random.split(key, 10)

    x = jax.random.normal(keys[0], (B, DIM, T), jnp.float32)

    params = {
        "w_dw": 0.3 * jax.random.normal(keys[1], (KERNEL, DIM), jnp.float32),
        "b_dw": 0.1 * jax.random.normal(keys[2], (1, DIM), jnp.float32),
        "ln_w": 1.0 + 0.1 * jax.random.normal(keys[7], (1, DIM), jnp.float32),
        "ln_b": 0.1 * jax.random.normal(keys[8], (1, DIM), jnp.float32),
        "w1":   0.2 * jax.random.normal(keys[3], (DIM, INTER), jnp.float32),
        "b1":   0.1 * jax.random.normal(keys[4], (1, INTER), jnp.float32),
        "w2":   0.2 * jax.random.normal(keys[5], (INTER, DIM), jnp.float32),
        "b2":   0.1 * jax.random.normal(keys[6], (1, DIM), jnp.float32),
        # non-trivial layer scale so the pointwise branch is actually exercised
        "gamma": 0.5 * jax.random.normal(keys[9], (1, DIM), jnp.float32),
    }

    out = convnext_block(x, params, kernel=KERNEL, dilation=DILATION)
    out = jax.block_until_ready(out)

    ref = _reference(x, params, kernel=KERNEL, dilation=DILATION)
    assert out.shape == (B, DIM, T)
    # bf16 MXU operands (f32 accumulate) + tanh-approx GELU -> relaxed tolerance
    assert jnp.allclose(out, ref, atol=5e-2, rtol=5e-2), "mismatch vs reference"

    print("KERNEL_OK")
</pallas_src>

<mosaic_0001>
module attributes {stable_mosaic.version = 11 : i64} {
  func.func @_convnext_block_kernel(%arg0: i32, %arg1: i32, %arg2: memref<1x16x8xf32, #tpu.memory_space<vmem>>, %arg3: memref<1x16x8xf32, #tpu.memory_space<vmem>>, %arg4: memref<3x8xf32, #tpu.memory_space<vmem>>, %arg5: memref<1x8xf32, #tpu.memory_space<vmem>>, %arg6: memref<8x32xbf16, #tpu.memory_space<vmem>>, %arg7: memref<1x32xf32, #tpu.memory_space<vmem>>, %arg8: memref<32x8xbf16, #tpu.memory_space<vmem>>, %arg9: memref<1x8xf32, #tpu.memory_space<vmem>>, %arg10: memref<1x16x8xf32, #tpu.memory_space<vmem>>, %arg11: memref<32x8xf32, #tpu.memory_space<vmem>>) attributes {dimension_semantics = [#tpu.dimension_semantics<parallel>, #tpu.dimension_semantics<parallel>], iteration_bounds = array<i64: 2, 1>, scalar_prefetch = 0 : i64, scratch_operands = 1 : i64, tpu.core_type = #tpu.core_type<tc>, window_params = [{transform_indices = @transform_0, window_bounds = array<i64: 1, 16, 8>}, {transform_indices = @transform_1, window_bounds = array<i64: 1, 16, 8>}, {pipeline_mode = #tpu.pipeline_mode<synchronous>, transform_indices = @transform_2, window_bounds = array<i64: 3, 8>}, {pipeline_mode = #tpu.pipeline_mode<synchronous>, transform_indices = @transform_3, window_bounds = array<i64: 1, 8>}, {pipeline_mode = #tpu.pipeline_mode<synchronous>, transform_indices = @transform_4, window_bounds = array<i64: 8, 32>}, {pipeline_mode = #tpu.pipeline_mode<synchronous>, transform_indices = @transform_5, window_bounds = array<i64: 1, 32>}, {pipeline_mode = #tpu.pipeline_mode<synchronous>, transform_indices = @transform_6, window_bounds = array<i64: 32, 8>}, {pipeline_mode = #tpu.pipeline_mode<synchronous>, transform_indices = @transform_7, window_bounds = array<i64: 1, 8>}, {transform_indices = @transform_8, window_bounds = array<i64: 1, 16, 8>}]} {
    %c0 = arith.constant 0 : index
    %c0_0 = arith.constant 0 : index
    %c0_1 = arith.constant 0 : index
    %0 = vector.load %arg2[%c0, %c0_0, %c0_1] : memref<1x16x8xf32, #tpu.memory_space<vmem>>, vector<1x16x8xf32>
    %1 = vector.shape_cast %0 : vector<1x16x8xf32> to vector<16x8xf32>
    %c0_2 = arith.constant 0 : index
    %c0_3 = arith.constant 0 : index
    %2 = vector.load %arg11[%c0_2, %c0_3] : memref<32x8xf32, #tpu.memory_space<vmem>>, vector<16x8xf32>
    tpu.vector_store %arg11[%c0_2, %c0_3], %1 {strides = array<i32>} : memref<32x8xf32, #tpu.memory_space<vmem>>, vector<16x8xf32>,
    %c0_4 = arith.constant 0 : index
    %c0_5 = arith.constant 0 : index
    %c0_6 = arith.constant 0 : index
    %3 = vector.load %arg3[%c0_4, %c0_5, %c0_6] : memref<1x16x8xf32, #tpu.memory_space<vmem>>, vector<1x16x8xf32>
    %4 = vector.shape_cast %3 : vector<1x16x8xf32> to vector<16x8xf32>
    %c16 = arith.constant 16 : index
    %c0_7 = arith.constant 0 : index
    %5 = vector.load %arg11[%c16, %c0_7] : memref<32x8xf32, #tpu.memory_space<vmem>>, vector<16x8xf32>
    tpu.vector_store %arg11[%c16, %c0_7], %4 {strides = array<i32>} : memref<32x8xf32, #tpu.memory_space<vmem>>, vector<16x8xf32>,
    %c0_8 = arith.constant 0 : index
    %c0_9 = arith.constant 0 : index
    %6 = vector.load %arg4[%c0_8, %c0_9] : memref<3x8xf32, #tpu.memory_space<vmem>>, vector<3x8xf32>
    %c6 = arith.constant 6 : index
    %c0_10 = arith.constant 0 : index
    %7 = vector.load %arg11[%c6, %c0_10] : memref<32x8xf32, #tpu.memory_space<vmem>>, vector<16x8xf32>
    %8 = vector.extract_strided_slice %6 {offsets = [0, 0], sizes = [1, 8], strides = [1, 1]} : vector<3x8xf32> to vector<1x8xf32>
    %9 = vector.broadcast %8 : vector<1x8xf32> to vector<16x8xf32>
    %10 = arith.mulf %7, %9 : vector<16x8xf32>
    %c8 = arith.constant 8 : index
    %c0_11 = arith.constant 0 : index
    %11 = vector.load %arg11[%c8, %c0_11] : memref<32x8xf32, #tpu.memory_space<vmem>>, vector<16x8xf32>
    %12 = vector.extract_strided_slice %6 {offsets = [1, 0], sizes = [1, 8], strides = [1, 1]} : vector<3x8xf32> to vector<1x8xf32>
    %13 = vector.broadcast %12 : vector<1x8xf32> to vector<16x8xf32>
    %14 = arith.mulf %11, %13 : vector<16x8xf32>
    %15 = arith.addf %10, %14 : vector<16x8xf32>
    %c10 = arith.constant 10 : index
    %c0_12 = arith.constant 0 : index
    %16 = vector.load %arg11[%c10, %c0_12] : memref<32x8xf32, #tpu.memory_space<vmem>>, vector<16x8xf32>
    %17 = vector.extract_strided_slice %6 {offsets = [2, 0], sizes = [1, 8], strides = [1, 1]} : vector<3x8xf32> to vector<1x8xf32>
    %18 = vector.broadcast %17 : vector<1x8xf32> to vector<16x8xf32>
    %19 = arith.mulf %16, %18 : vector<16x8xf32>
    %20 = arith.addf %15, %19 : vector<16x8xf32>
    %c0_13 = arith.constant 0 : index
    %c0_14 = arith.constant 0 : index
    %21 = vector.load %arg5[%c0_13, %c0_14] : memref<1x8xf32, #tpu.memory_space<vmem>>, vector<1x8xf32>
    %22 = vector.broadcast %21 : vector<1x8xf32> to vector<16x8xf32>
    %23 = arith.addf %20, %22 : vector<16x8xf32>
    %cst = arith.constant dense<0.000000e+00> : vector<16xf32>
    %24 = vector.multi_reduction <add>, %23, %cst [1] : vector<16x8xf32> to vector<16xf32>
    %25 = vector.shape_cast %24 : vector<16xf32> to vector<16x1xf32>
    %cst_15 = arith.constant 1.250000e-01 : f32
    %26 = vector.broadcast %cst_15 : f32 to vector<16x1xf32>
    %27 = arith.mulf %25, %26 : vector<16x1xf32>
    %28 = arith.mulf %23, %23 : vector<16x8xf32>
    %cst_16 = arith.constant dense<0.000000e+00> : vector<16xf32>
    %29 = vector.multi_reduction <add>, %28, %cst_16 [1] : vector<16x8xf32> to vector<16xf32>
    %30 = vector.shape_cast %29 : vector<16xf32> to vector<16x1xf32>
    %cst_17 = arith.constant 1.250000e-01 : f32
    %31 = vector.broadcast %cst_17 : f32 to vector<16x1xf32>
    %32 = arith.mulf %30, %31 : vector<16x1xf32>
    %33 = arith.mulf %27, %27 : vector<16x1xf32>
    %34 = arith.subf %32, %33 : vector<16x1xf32>
    %cst_18 = arith.constant 0.000000e+00 : f32
    %35 = vector.broadcast %cst_18 : f32 to vector<16x1xf32>
    %36 = arith.maximumf %34, %35 : vector<16x1xf32>
    %37 = vector.broadcast %27 : vector<16x1xf32> to vector<16x8xf32>
    %38 = arith.subf %23, %37 : vector<16x8xf32>
    %cst_19 = arith.constant 9.99999997E-7 : f32
    %39 = vector.broadcast %cst_19 : f32 to vector<16x1xf32>
    %40 = arith.addf %36, %39 : vector<16x1xf32>
    %41 = math.rsqrt %40 : vector<16x1xf32>
    %42 = vector.broadcast %41 : vector<16x1xf32> to vector<16x8xf32>
    %43 = arith.mulf %38, %42 : vector<16x8xf32>
    %44 = arith.truncf %43 : vector<16x8xf32> to vector<16x8xbf16>
    %c0_20 = arith.constant 0 : index
    %c0_21 = arith.constant 0 : index
    %45 = vector.load %arg6[%c0_20, %c0_21] : memref<8x32xbf16, #tpu.memory_space<vmem>>, vector<8x32xbf16>
    %cst_22 = arith.constant dense<0.000000e+00> : vector<16x32xf32>
    %46 = tpu.matmul %44, %45, %cst_22 {dimension_numbers = #tpu.dot_dimension_numbers<[1], [0], [0], [1], [0, 0, 1, 1], [], []>} : vector<16x8xbf16>, vector<8x32xbf16>, vector<16x32xf32> -> vector<16x32xf32>
    %c0_23 = arith.constant 0 : index
    %c0_24 = arith.constant 0 : index
    %47 = vector.load %arg7[%c0_23, %c0_24] : memref<1x32xf32, #tpu.memory_space<vmem>>, vector<1x32xf32>
    %48 = vector.broadcast %47 : vector<1x32xf32> to vector<16x32xf32>
    %49 = arith.addf %46, %48 : vector<16x32xf32>
    %cst_25 = arith.constant 5.000000e-01 : f32
    %50 = vector.broadcast %cst_25 : f32 to vector<16x32xf32>
    %51 = arith.mulf %50, %49 : vector<16x32xf32>
    %52 = arith.mulf %49, %49 : vector<16x32xf32>
    %53 = arith.mulf %52, %49 : vector<16x32xf32>
    %cst_26 = arith.constant 4.471500e-02 : f32
    %54 = vector.broadcast %cst_26 : f32 to vector<16x32xf32>
    %55 = arith.mulf %54, %53 : vector<16x32xf32>
    %56 = arith.addf %49, %55 : vector<16x32xf32>
    %cst_27 = arith.constant 0.797884583 : f32
    %57 = vector.broadcast %cst_27 : f32 to vector<16x32xf32>
    %58 = arith.mulf %57, %56 : vector<16x32xf32>
    %59 = math.tanh %58 : vector<16x32xf32>
    %cst_28 = arith.constant 1.000000e+00 : f32
    %60 = vector.broadcast %cst_28 : f32 to vector<16x32xf32>
    %61 = arith.addf %60, %59 : vector<16x32xf32>
    %62 = arith.mulf %51, %61 : vector<16x32xf32>
    %63 = arith.truncf %62 : vector<16x32xf32> to vector<16x32xbf16>
    %c0_29 = arith.constant 0 : index
    %c0_30 = arith.constant 0 : index
    %64 = vector.load %arg8[%c0_29, %c0_30] : memref<32x8xbf16, #tpu.memory_space<vmem>>, vector<32x8xbf16>
    %cst_31 = arith.constant dense<0.000000e+00> : vector<16x8xf32>
    %65 = tpu.matmul %63, %64, %cst_31 {dimension_numbers = #tpu.dot_dimension_numbers<[1], [0], [0], [1], [0, 0, 1, 1], [], []>} : vector<16x32xbf16>, vector<32x8xbf16>, vector<16x8xf32> -> vector<16x8xf32>
    %c0_32 = arith.constant 0 : index
    %c0_33 = arith.constant 0 : index
    %66 = vector.load %arg9[%c0_32, %c0_33] : memref<1x8xf32, #tpu.memory_space<vmem>>, vector<1x8xf32>
    %67 = vector.broadcast %66 : vector<1x8xf32> to vector<16x8xf32>
    %68 = arith.addf %65, %67 : vector<16x8xf32>
    %c8_34 = arith.constant 8 : index
    %c0_35 = arith.constant 0 : index
    %69 = vector.load %arg11[%c8_34, %c0_35] : memref<32x8xf32, #tpu.memory_space<vmem>>, vector<16x8xf32>
    %70 = arith.addf %68, %69 : vector<16x8xf32>
    %c0_36 = arith.constant 0 : index
    %c0_37 = arith.constant 0 : index
    %c0_38 = arith.constant 0 : index
    %71 = vector.load %arg10[%c0_36, %c0_37, %c0_38] : memref<1x16x8xf32, #tpu.memory_space<vmem>>, vector<1x16x8xf32>
    %72 = vector.shape_cast %71 : vector<1x16x8xf32> to vector<16x8xf32>
    %73 = vector.shape_cast %70 : vector<16x8xf32> to vector<1x16x8xf32>
    tpu.vector_store %arg10[%c0_36, %c0_37, %c0_38], %73 {strides = array<i32>} : memref<1x16x8xf32, #tpu.memory_space<vmem>>, vector<1x16x8xf32>,
    return
  }
  func.func @transform_0(%arg0: i32, %arg1: i32) -> (i32, i32, i32) {
    %c0_i32 = arith.constant 0 : i32
    %c0_i32_0 = arith.constant 0 : i32
    return %arg0, %arg1, %c0_i32 : i32, i32, i32
  }
  func.func @transform_1(%arg0: i32, %arg1: i32) -> (i32, i32, i32) {
    %c1_i32 = arith.constant 1 : i32
    %0 = arith.addi %arg1, %c1_i32 : i32
    %c1_i32_0 = arith.constant 1 : i32
    %1 = arith.muli %0, %c1_i32_0 : i32
    %c0_i32 = arith.constant 0 : i32
    %c0_i32_1 = arith.constant 0 : i32
    return %arg0, %1, %c0_i32 : i32, i32, i32
  }
  func.func @transform_2(%arg0: i32, %arg1: i32) -> (i32, i32) {
    %c0_i32 = arith.constant 0 : i32
    %c0_i32_0 = arith.constant 0 : i32
    %c0_i32_1 = arith.constant 0 : i32
    return %c0_i32, %c0_i32_0 : i32, i32
  }
  func.func @transform_3(%arg0: i32, %arg1: i32) -> (i32, i32) {
    %c0_i32 = arith.constant 0 : i32
    %c0_i32_0 = arith.constant 0 : i32
    %c0_i32_1 = arith.constant 0 : i32
    return %c0_i32, %c0_i32_0 : i32, i32
  }
  func.func @transform_4(%arg0: i32, %arg1: i32) -> (i32, i32) {
    %c0_i32 = arith.constant 0 : i32
    %c0_i32_0 = arith.constant 0 : i32
    %c0_i32_1 = arith.constant 0 : i32
    return %c0_i32, %c0_i32_0 : i32, i32
  }
  func.func @transform_5(%arg0: i32, %arg1: i32) -> (i32, i32) {
    %c0_i32 = arith.constant 0 : i32
    %c0_i32_0 = arith.constant 0 : i32
    %c0_i32_1 = arith.constant 0 : i32
    return %c0_i32, %c0_i32_0 : i32, i32
  }
  func.func @transform_6(%arg0: i32, %arg1: i32) -> (i32, i32) {
    %c0_i32 = arith.constant 0 : i32
    %c0_i32_0 = arith.constant 0 : i32
    %c0_i32_1 = arith.constant 0 : i32
    return %c0_i32, %c0_i32_0 : i32, i32
  }
  func.func @transform_7(%arg0: i32, %arg1: i32) -> (i32, i32) {
    %c0_i32 = arith.constant 0 : i32
    %c0_i32_0 = arith.constant 0 : i32
    %c0_i32_1 = arith.constant 0 : i32
    return %c0_i32, %c0_i32_0 : i32, i32
  }
  func.func @transform_8(%arg0: i32, %arg1: i32) -> (i32, i32, i32) {
    %c0_i32 = arith.constant 0 : i32
    %c0_i32_0 = arith.constant 0 : i32
    return %arg0, %arg1, %c0_i32 : i32, i32, i32
  }
}

</mosaic_0001>

<bundles_post_ra>
// kernel: tpu_custom_call.1
= control target key start
LH: loop header
LB: loop body
LE: loop exit
PB: predicated region body
PF: predicated region fallthrough
CT: control target
= control target key end

     0   :  { %s872_s27 = smov 0   ;;  %s874_s28 = smov 0   ;;  %s952_s0 = inlined_call_operand.vmem [shape: f32[2,32,8], index: 0, kind: input, shape index: {}]   ;;  %s953_s1 = inlined_call_operand.vmem [shape: f32[2,32,8], index: 1, kind: input, shape index: {}]   ;;  %s954_s2 = inlined_call_operand.vmem [shape: f32[3,8], index: 2, kind: input, shape index: {}]   ;;  %s955_s3 = inlined_call_operand.vmem [shape: f32[1,8], index: 3, kind: input, shape index: {}]   ;;  %s956_s4 = inlined_call_operand.vmem [shape: bf16[8,32], index: 4, kind: input, shape index: {}]   ;;  %s957_s5 = inlined_call_operand.vmem [shape: f32[1,32], index: 5, kind: input, shape index: {}]   ;;  %s958_s6 = inlined_call_operand.vmem [shape: bf16[32,8], index: 6, kind: input, shape index: {}]   ;;  %s959_s7 = inlined_call_operand.vmem [shape: f32[1,8], index: 7, kind: input, shape index: {}]   ;;  %s960_s8 = inlined_call_operand.vmem [shape: f32[2,16,8], index: 8, kind: output, shape index: {}]  }
   0x1   :  { %s876_s29 = smov 0  }
   0x2 LB: > { %s30_s30 = sadd.s32 1, %s819_s28  ;;  %p725_p0 = scmp.ge.s32.totalorder %s823_s29, 1  ;;  %s823_s29 = sphi %s876_s29, %s18_s29   ;;  %s819_s28 = sphi %s874_s28, %s962_s28   ;;  %s815_s27 = sphi %s872_s27, %s961_s27  }
   0x3   : > { %p32_p1 = scmp.ge.s32.totalorder %s30_s30, 2  ;;  %p304_p2 = scmp.lt.s32.totalorder %s823_s29, 3 }
   0x5   : > { %s964_s30 = smov (%p32_p1, %s30_s30), 0  ;;  %p305_p3 = pnand %p725_p0, %p304_p2 }
   0x6   : > { %p357_p4 = scmp.lt.s32.totalorder (!%p305_p3), %s815_s27, 1 }
   0x7   : > { %308 = sbr.rel (%p305_p3) target bundleno = 635 (0x27b), region = 52 }
   0xc   : > { %v401_v0 = vlaneseq  ;;  %s966_s27 = smov (!%p357_p4, %s815_s27), 1  ;;  %vm391_vm0 = vcmask 64512   ;;  %v398_v8 = vld [vmem:[%s954_s2] sm:$0x7]  ;;  %vm480_vm1 = vcmask 1043456   ;;  %v825_v39 = vmov 0.0  }
   0xd   : > { %s741_s9 = sshll.u32 %s966_s27, 5  ;;  %v732_v26 = vld [vmem:[%s955_s3] ss:$0 sm:$0xff]  ;;  %751 = vmatprep.subr.bf16.mxu0 %v825_v39  ;;  %vm826_vm2 = vmmov 0   ;;  %757 = vmatprep.subr.bf16.mxu1 %v825_v39  ;;  %vm567_vm3 = vcmask 261120  }
   0xe   : > { %v402_v1 = vshrl.u32 %v401_v0, 7  ;;  %s364_s12 = scalar_lea.vmem %s952_s0, %s741_s9  ;;  %s743_s13 = sadd.s32 16, %s741_s9  ;;  %v469_v38 = vld [vmem:[%s956_s4] sm:$0xf]  ;;  %753 = vmatprep.mubr.msk.bf16.mxu0 %vm826_vm2, %v825_v39  ;;  %761 = vmatprep.mubr.msk.bf16.mxu1 %vm826_vm2, %v825_v39  ;;  %v791_v0 = vld [vmem:[%s958_s6 + $0x8] sm:$0xff]  }
   0xf   : > { %s375_s16 = scalar_lea.vmem %s953_s1, %s743_s13  ;;  %v389_v2 = vld [vmem:[%s364_s12] sm:$0xff]  ;;  %v390_v3 = vld [vmem:[%s364_s12 + $0x8] sm:$0xff]  ;;  %v482_v40 = vsel %vm480_vm1, %v469_v38, 0  ;;  %758 = vmatpush3.bf16.msra.mxu1 %v791_v0  ;;  %s744_s13 = sshll.u32 %s966_s27, 4 }
  0x10   : > { %392 = vst.msk [vmem:[#allocation2] sm:$0xff] %vm391_vm0, %v389_v2  ;;  %393 = vst.msk [vmem:[#allocation2 + $0x8] sm:$0xff] %vm391_vm0, %v390_v3  ;;  %v394_v4 = vld [vmem:[%s375_s16] sm:$0xff]  ;;  %v403_v5 = vsub.s32 0, %v402_v1  ;;  %v411_v6 = vsub.s32 1, %v402_v1  ;;  %v395_v7 = vld [vmem:[%s375_s16 + $0x8] sm:$0xff]  ;;  %752 = vmatpush3.bf16.msra.mxu0 %v482_v40  ;;  %759 = vmatprep.subr.bf16.mxu1 %v825_v39  ;;  %s386_s16 = scalar_lea.vmem %s960_s8, %s744_s13 }
  0x11   : > { %396 = vst.msk [vmem:[#allocation2 + $0x10] sm:$0xff] %vm391_vm0, %v394_v4  ;;  %v421_v9 = vsub.s32 2, %v402_v1  ;;  %397 = vst.msk [vmem:[#allocation2 + $0x18] sm:$0xff] %vm391_vm0, %v395_v7  ;;  %v792_v1 = vld [vmem:[%s958_s6] sm:$0xff]  }
  0x12   : > { %v404_v10 = vrot.slane %v398_v8, %v403_v5  ;;  %v412_v11 = vrot.slane %v398_v8, %v411_v6  ;;  %v733_v2 = vld [vmem:[%s957_s5] ss:$0 sm:$0xff] }
  0x13   : > { %v422_v12 = vrot.slane %v398_v8, %v421_v9  ;;  %760 = vmatpush3.bf16.msra.mxu1 %v792_v1 }
  0x17   : > { %v399_v13 = vld [vmem:[#allocation2 + $0x6] sm:$0xff] }
  0x18   : > { %v906_v14 = vld [vmem:[#allocation2 + $0x8] sm:$0xff]  ;;  %v405_v15 = vmul.f32 %v404_v10, %v399_v13  ;;  %v909_v19 = vld [vmem:[#allocation2 + $0x10] sm:$0xff] }
  0x19   : > { %v413_v16 = vmul.f32 %v412_v11, %v906_v14  ;;  %v417_v17 = vld [vmem:[#allocation2 + $0xa] sm:$0xff]  ;;  %v414_v22 = vmul.f32 %v412_v11, %v909_v19  ;;  %v418_v23 = vld [vmem:[#allocation2 + $0x12] sm:$0xff] }
  0x1a   : > { %v400_v18 = vld [vmem:[#allocation2 + $0xe] sm:$0xff]  ;;  %v423_v20 = vmul.f32 %v422_v12, %v417_v17  ;;  %v424_v25 = vmul.f32 %v422_v12, %v418_v23 }
  0x1b   : > { %v406_v21 = vmul.f32 %v404_v10, %v400_v18  ;;  %v415_v24 = vadd.f32 %v413_v16, %v405_v15 }
  0x1d   : > { %v416_v27 = vadd.f32 %v414_v22, %v406_v21  ;;  %v425_v28 = vadd.f32 %v423_v20, %v415_v24 }
  0x1f   : > { %v426_v29 = vadd.f32 %v424_v25, %v416_v27  ;;  %v434_v30 = vadd.f32 %v732_v26, %v425_v28 }
  0x21   : > { %v435_v31 = vadd.f32 %v732_v26, %v426_v29  ;;  %v436_v32 = vsel %vm391_vm0, %v434_v30, 0.0  ;;  %v444_v33 = vmul.f32 %v434_v30, %v434_v30 }
  0x22   : > { %437 = vadd.xlane.f32.xlu0 %v436_v32 }
  0x23   : > { %v445_v34 = vmul.f32 %v435_v31, %v435_v31  ;;  %v446_v35 = vsel %vm391_vm0, %v444_v33, 0.0  ;;  %v439_v36 = vsel %vm391_vm0, %v435_v31, 0.0 }
  0x24   : > { %447 = vadd.xlane.f32.xlu1 %v446_v35 }
  0x25   : > { %v449_v37 = vsel %vm391_vm0, %v445_v34, 0.0 }
  0x26   : > { %440 = vadd.xlane.f32.xlu0 %v439_v36 }
  0x28   : > { %450 = vadd.xlane.f32.xlu1 %v449_v37 }
  0xab   : > { %v438_v41 = vpop.xlane.xlu0 %437 }
  0xac   : > { %v442_v42 = vmul.f32 0.125, %v438_v41 }
  0xad   : > { %v448_v43 = vpop.xlane.xlu1 %447 }
  0xae   : > { %v454_v44 = vmul.f32 %v442_v42, %v442_v42  ;;  %v452_v45 = vmul.f32 0.125, %v448_v43  ;;  %v460_v58 = vsub.f32 %v434_v30, %v442_v42  ;;  %v735_v30 = vld [vmem:[%s959_s7] ss:$0 sm:$0xff] }
  0xaf   : > { %v441_v46 = vpop.xlane.xlu0 %440 }
  0xb0   : > { %v456_v47 = vsub.f32 %v452_v45, %v454_v44  ;;  %v443_v48 = vmul.f32 0.125, %v441_v46 }
  0xb1   : > { %v451_v49 = vpop.xlane.xlu1 %450 }
  0xb2   : > { %v458_v50 = vmax.f32 %v456_v47, 0.0  ;;  %v455_v51 = vmul.f32 %v443_v48, %v443_v48  ;;  %v453_v52 = vmul.f32 0.125, %v451_v49  ;;  %v461_v59 = vsub.f32 %v435_v31, %v443_v48 }
  0xb4   : > { %v462_v53 = vadd.f32 1e-06, %v458_v50  ;;  %v457_v54 = vsub.f32 %v453_v52, %v455_v51 }
  0xb6   : > { %v459_v55 = vmax.f32 %v457_v54, 0.0  ;;  %793 = vrsqrt.f32 %v462_v53 }
  0xb8   : > { %v463_v56 = vadd.f32 1e-06, %v459_v55 }
  0xba   : > { %795 = vrsqrt.f32 %v463_v56 }
  0xc3   : > { %v794_v57 = vpop.eup %793 }
  0xc4   : > { %v466_v61 = vmul.f32 %v794_v57, %v460_v58 }
  0xc7   : > { %v796_v60 = vpop.eup %795 }
  0xc8   : > { %v467_v62 = vmul.f32 %v796_v60, %v461_v59 }
  0xca   : > { %v468_v63 = vpack.c.bf16 %v467_v62, %v466_v61 }
  0xcc   : > { %754 = vmatmul.mubr.msk.bf16.vlgmr.msra.gmra.mxu0 %vm391_vm0, %v468_v63 }
 0x18c   : > { %v518_v3 = vpop.f32.mrf.mxu0 }
 0x18d   : > { %v519_v4 = vadd.f32 %v733_v2, %v518_v3 }
 0x18e   : > { %v755_v5 = vpop.f32.mrf.mxu0 }
 0x18f   : > { %v527_v6 = vmul.f32 %v519_v4, %v519_v4  ;;  %v525_v24 = vmul.f32 0.5, %v519_v4 }
 0x190   : > { %v521_v7 = vpop.f32.mrf.mxu0 }
 0x191   : > { %v529_v8 = vmul.f32 %v527_v6, %v519_v4  ;;  %v522_v9 = vadd.f32 %v733_v2, %v521_v7 }
 0x192   : > { %v756_v10 = vpop.f32.mrf.mxu0 }
 0x193   : > { %v531_v11 = vmul.f32 0.044715, %v529_v8  ;;  %v528_v12 = vmul.f32 %v522_v9, %v522_v9  ;;  %v526_v25 = vmul.f32 0.5, %v522_v9 }
 0x195   : > { %v533_v13 = vadd.f32 %v531_v11, %v519_v4  ;;  %v530_v15 = vmul.f32 %v528_v12, %v522_v9 }
 0x197   : > { %v535_v16 = vmul.f32 0.7978846, %v533_v13  ;;  %v532_v17 = vmul.f32 0.044715, %v530_v15 }
 0x199   : > { %797 = vtanh.f32 %v535_v16  ;;  %v534_v18 = vadd.f32 %v532_v17, %v522_v9 }
 0x19b   : > { %v536_v20 = vmul.f32 0.7978846, %v534_v18 }
 0x19d   : > { %799 = vtanh.f32 %v536_v20 }
 0x1a6   : > { %v798_v21 = vpop.eup %797 }
 0x1a7   : > { %v539_v22 = vadd.f32 1.0, %v798_v21 }
 0x1a9   : > { %v541_v27 = vmul.f32 %v539_v22, %v525_v24 }
 0x1aa   : > { %v800_v23 = vpop.eup %799 }
 0x1ab   : > { %v540_v26 = vadd.f32 1.0, %v800_v23 }
 0x1ad   : > { %v542_v28 = vmul.f32 %v540_v26, %v526_v25 }
 0x1af   : > { %v543_v29 = vpack.c.bf16 %v542_v28, %v541_v27 }
 0x1b1   : > { %762 = vmatmul.mubr.msk.bf16.vlgmr.msra.gmra.mxu1 %vm567_vm3, %v543_v29 }
 0x271   : > { %v605_v31 = vpop.f32.mrf.mxu1 }
 0x272   : > { %v606_v32 = vadd.f32 %v735_v30, %v605_v31 }
 0x273   : > { %v763_v33 = vpop.f32.mrf.mxu1 }
 0x274   : > { %v612_v34 = vadd.f32 %v606_v32, %v906_v14 }
 0x275   : > { %v608_v35 = vpop.f32.mrf.mxu1 }
 0x276   : > { %614 = vst.msk [vmem:[%s386_s16] sm:$0xff] %vm391_vm0, %v612_v34  ;;  %v609_v36 = vadd.f32 %v735_v30, %v608_v35 }
 0x277   : > { %v764_v37 = vpop.f32.mrf.mxu1 }
 0x278   : > { %v613_v38 = vadd.f32 %v609_v36, %v909_v19 }
 0x27a   : > { %615 = vst.msk [vmem:[%s386_s16 + $0x8] sm:$0xff] %vm391_vm0, %v613_v38 }
 0x27b PF: > { %s18_s29 = sadd.s32 1, %s823_s29   ;;  %s961_s27 = smov %s819_s28 }
 0x27c   : > { %p15_p5 = scmp.ge.s32.totalorder %s18_s29, 4   ;;  %s962_s28 = smov %s964_s30 }
 0x27e   :  { %17 = sbr.rel (!%p15_p5) target bundleno = 2 (0x2), region = 85 }

</bundles_post_ra>
